<compile_context>
chip_gen: v6e
topology: v6e:2x2x1
jax: 0.10.0
libtpu: 0.0.40
codegen_flags: <defaults>
</compile_context>

<pallas_src>
from functools import partial

import jax
import jax.numpy as jnp
from jax import lax
from jax.experimental import pallas as pl
from jax.experimental.pallas import tpu as pltpu


def _round_up(x, m):
    return ((x + m - 1) // m) * m


def _vmem_limit_bytes():
    # v5e/v6e: 128 MiB physical VMEM, v7x: 64 MiB.  Budget ~75% of physical,
    # capped so the compiler keeps headroom for its own scratch.
    try:
        cap = int(pltpu.get_tpu_info().vmem_capacity_bytes)
    except Exception:
        cap = 64 * 1024 * 1024
    return int(min(cap * 3 // 4, 112 * 1024 * 1024))


def _make_kernel(K, TT, tap_leading, tap_offsets):
    """Build the per-tile kernel.

    tap_leading[k]: static index into x_ref's leading (tap) axis for tap k.
    tap_offsets[k]: static lane offset of tap k inside the x block.
    """

    def kernel(x_ref, w_ref, b_ref, o_ref):
        # x_ref: (A, 1, C_in_pad, W) f32   w_ref: (K, C_out_pad, C_in_pad) f32
        # b_ref: (C_out_pad, 1) f32        o_ref: (1, C_out_pad, TT) f32
        acc = None
        for k in range(K):  # K is small & static -> unrolled, all slices static
            off = tap_offsets[k]
            slab = x_ref[tap_leading[k], 0, :, off:off + TT]     # (C_in_pad, TT)
            part = jnp.dot(w_ref[k], slab, preferred_element_type=jnp.float32)
            acc = part if acc is None else acc + part
        o_ref[0] = (acc + b_ref[...]).astype(o_ref.dtype)

    return kernel


@partial(jax.jit, static_argnames=("stride", "dilation"))
def conv1d_causal(x, weight, bias, *, stride=1, dilation=1):
    """Pallas TPU forward of PyTorch `Conv1dCausal`.

    x: (B, C_in, T) f32 (NCW), weight: (C_out, C_in, K), bias: (C_out,)
    returns y: (B, C_out, T_out) f32 with T_out = (T-1)//stride + 1.
    """
    B, C_in, T = x.shape
    C_out, C_in_w, K = weight.shape
    assert C_in_w == C_in
    pad_left = (K - 1) * dilation
    T_out = (T - 1) // stride + 1

    C_in_pad = _round_up(C_in, 8)        # f32 sublane multiple
    C_out_pad = _round_up(C_out, 8)

    # Time tile: multiple of 128 lanes; big enough to amortize the ~0.35us
    # per-grid-step overhead (sweep 1024-8192 for production shapes).
    TT = min(4096, _round_up(T_out, 128))
    if B < 2:
        # Keep >=2 time tiles when possible so both v7x TensorCores get work.
        TT = min(TT, max(128, _round_up(T_out, 256) // 2))
    n_t = -(-T_out // TT)
    T_out_pad = n_t * TT

    x = x.astype(jnp.float32)
    w_p = jnp.transpose(weight, (2, 0, 1)).astype(jnp.float32)        # (K, C_out, C_in)
    w_p = jnp.pad(w_p, ((0, 0), (0, C_out_pad - C_out), (0, C_in_pad - C_in)))
    b_p = jnp.pad(bias.astype(jnp.float32), (0, C_out_pad - C_out)).reshape(C_out_pad, 1)

    if stride == 1:
        # One causally padded copy, repacked into per-tile blocks with a
        # (K-1)*dilation halo; the K dilated taps become static lane slices
        # inside the kernel (no Kx im2col traffic).
        W = TT + pad_left
        L = T_out_pad + pad_left
        x_pad = jnp.pad(x, ((0, 0), (0, C_in_pad - C_in), (pad_left, L - pad_left - T)))
        x_in = jnp.stack(
            [lax.slice_in_dim(x_pad, j * TT, j * TT + W, axis=2) for j in range(n_t)],
            axis=1)                                            # (B, n_t, C_in_pad, W)
        in_spec = pl.BlockSpec((1, 1, C_in_pad, W), lambda b, j: (b, j, 0, 0))
        kernel = _make_kernel(K, TT, [0] * K, [k * dilation for k in range(K)])
    else:
        # Strided taps gathered once in the wrapper (~K/stride x activation).
        # TODO(synk): a phase-decomposed in-kernel gather would avoid this copy.
        x_pad = jnp.pad(x, ((0, 0), (0, C_in_pad - C_in), (pad_left, 0)))
        taps = [lax.slice_in_dim(x_pad, k * dilation,
                                 k * dilation + (T_out - 1) * stride + 1,
                                 stride=stride, axis=2) for k in range(K)]
        x_in = jnp.pad(jnp.stack(taps, axis=0),
                       ((0, 0), (0, 0), (0, 0), (0, T_out_pad - T_out)))
        in_spec = pl.BlockSpec((K, 1, C_in_pad, TT), lambda b, j: (0, b, 0, j))
        kernel = _make_kernel(K, TT, list(range(K)), [0] * K)

    cost = pl.CostEstimate(
        flops=2 * B * T_out * K * C_in * C_out,
        transcendentals=0,
        bytes_accessed=int(x_in.size * 4 + w_p.size * 4 + b_p.size * 4
                           + B * C_out_pad * T_out_pad * 4),
    )

    y_full = pl.pallas_call(
        kernel,
        out_shape=jax.ShapeDtypeStruct((B, C_out_pad, T_out_pad), jnp.float32),
        grid=(B, n_t),
        in_specs=[
            in_spec,
            # Weight / bias: constant block index -> fetched once and reused.
            pl.BlockSpec((K, C_out_pad, C_in_pad), lambda b, j: (0, 0, 0)),
            pl.BlockSpec((C_out_pad, 1), lambda b, j: (0, 0)),
        ],
        out_specs=pl.BlockSpec((1, C_out_pad, TT), lambda b, j: (b, 0, j)),
        compiler_params=pltpu.CompilerParams(
            dimension_semantics=("parallel", "parallel"),
            vmem_limit_bytes=_vmem_limit_bytes(),
        ),
        cost_estimate=cost,
    )(x_in, w_p, b_p)

    # Drop channel / time padding; output is already NCW (no transpose needed).
    return y_full[:, :C_out, :T_out]


def _reference(x, weight, bias, *, stride, dilation):
    pad = (weight.shape[-1] - 1) * dilation
    y = lax.conv_general_dilated(
        x, weight,
        window_strides=(stride,),
        padding=[(pad, 0)],
        rhs_dilation=(dilation,),
        dimension_numbers=("NCH", "OIH", "NCH"),
        precision=lax.Precision.HIGHEST,
    )
    return y + bias[None, :, None]


if __name__ == "__main__":
    # Small shapes consistent with the module: batch=2, in=4, out=8, T=16, K=3.
    B, C_in, C_out, T, K = 2, 4, 8, 16, 3

    key = jax.random.PRNGKey(0)
    kx, kw, kb = jax.random.split(key, 3)
    x = jax.random.normal(kx, (B, C_in, T), dtype=jnp.float32)

    # Deterministic init mirroring nn.Conv1d's uniform(-1/sqrt(fan_in), +...).
    fan_in = C_in * K
    bound = 1.0 / (fan_in ** 0.5)
    weight = jax.random.uniform(kw, (C_out, C_in, K), jnp.float32, -bound, bound)
    bias = jax.random.uniform(kb, (C_out,), jnp.float32, -bound, bound)

    # Exercise the plain, dilated (stride=1) and strided (stride=2) paths.
    for stride, dilation in ((1, 1), (1, 2), (2, 1)):
        T_out = (T - 1) // stride + 1
        y = conv1d_causal(x, weight, bias, stride=stride, dilation=dilation)
        y = jax.block_until_ready(y)
        y_ref = _reference(x, weight, bias, stride=stride, dilation=dilation)
        assert y.shape == y_ref.shape == (B, C_out, T_out)
        # Default-precision MXU passes round intermediates to ~bf16; allow that.
        assert jnp.allclose(y, y_ref, atol=2e-2, rtol=2e-2), (
            f"mismatch vs reference (stride={stride}, dilation={dilation}), "
            f"max|err|={float(jnp.max(jnp.abs(y - y_ref)))}")

    print("KERNEL_OK")
</pallas_src>

<mosaic_0001>
module attributes {stable_mosaic.version = 11 : i64} {
  func.func @kernel(%arg0: i32, %arg1: i32, %arg2: memref<1x1x8x130xf32, #tpu.memory_space<vmem>>, %arg3: memref<3x8x8xf32, #tpu.memory_space<vmem>>, %arg4: memref<8x1xf32, #tpu.memory_space<vmem>>, %arg5: memref<1x8x128xf32, #tpu.memory_space<vmem>>) attributes {dimension_semantics = [#tpu.dimension_semantics<parallel>, #tpu.dimension_semantics<parallel>], iteration_bounds = array<i64: 2, 1>, scalar_prefetch = 0 : i64, scratch_operands = 0 : i64, tpu.core_type = #tpu.core_type<tc>, window_params = [{transform_indices = @transform_0, window_bounds = array<i64: 1, 1, 8, 130>}, {pipeline_mode = #tpu.pipeline_mode<synchronous>, transform_indices = @transform_1, window_bounds = array<i64: 3, 8, 8>}, {pipeline_mode = #tpu.pipeline_mode<synchronous>, transform_indices = @transform_2, window_bounds = array<i64: 8, 1>}, {transform_indices = @transform_3, window_bounds = array<i64: 1, 8, 128>}]} {
    %c0 = arith.constant 0 : index
    %c0_0 = arith.constant 0 : index
    %c0_1 = arith.constant 0 : index
    %c0_2 = arith.constant 0 : index
    %0 = vector.load %arg2[%c0, %c0_0, %c0_1, %c0_2] : memref<1x1x8x130xf32, #tpu.memory_space<vmem>>, vector<1x1x8x128xf32>
    %1 = vector.shape_cast %0 : vector<1x1x8x128xf32> to vector<8x128xf32>
    %c0_3 = arith.constant 0 : index
    %c0_4 = arith.constant 0 : index
    %c0_5 = arith.constant 0 : index
    %2 = vector.load %arg3[%c0_3, %c0_4, %c0_5] : memref<3x8x8xf32, #tpu.memory_space<vmem>>, vector<1x8x8xf32>
    %3 = vector.shape_cast %2 : vector<1x8x8xf32> to vector<8x8xf32>
    %cst = arith.constant dense<0.000000e+00> : vector<8x128xf32>
    %4 = tpu.matmul %3, %1, %cst {dimension_numbers = #tpu.dot_dimension_numbers<[1], [0], [0], [1], [0, 0, 1, 1], [], []>} : vector<8x8xf32>, vector<8x128xf32>, vector<8x128xf32> -> vector<8x128xf32>
    %c0_6 = arith.constant 0 : index
    %c0_7 = arith.constant 0 : index
    %c0_8 = arith.constant 0 : index
    %c1 = arith.constant 1 : index
    %5 = vector.load %arg2[%c0_6, %c0_7, %c0_8, %c1] : memref<1x1x8x130xf32, #tpu.memory_space<vmem>>, vector<1x1x8x128xf32>
    %6 = vector.shape_cast %5 : vector<1x1x8x128xf32> to vector<8x128xf32>
    %c1_9 = arith.constant 1 : index
    %c0_10 = arith.constant 0 : index
    %c0_11 = arith.constant 0 : index
    %7 = vector.load %arg3[%c1_9, %c0_10, %c0_11] : memref<3x8x8xf32, #tpu.memory_space<vmem>>, vector<1x8x8xf32>
    %8 = vector.shape_cast %7 : vector<1x8x8xf32> to vector<8x8xf32>
    %cst_12 = arith.constant dense<0.000000e+00> : vector<8x128xf32>
    %9 = tpu.matmul %8, %6, %cst_12 {dimension_numbers = #tpu.dot_dimension_numbers<[1], [0], [0], [1], [0, 0, 1, 1], [], []>} : vector<8x8xf32>, vector<8x128xf32>, vector<8x128xf32> -> vector<8x128xf32>
    %10 = arith.addf %4, %9 : vector<8x128xf32>
    %c0_13 = arith.constant 0 : index
    %c0_14 = arith.constant 0 : index
    %c0_15 = arith.constant 0 : index
    %c2 = arith.constant 2 : index
    %11 = vector.load %arg2[%c0_13, %c0_14, %c0_15, %c2] : memref<1x1x8x130xf32, #tpu.memory_space<vmem>>, vector<1x1x8x128xf32>
    %12 = vector.shape_cast %11 : vector<1x1x8x128xf32> to vector<8x128xf32>
    %c2_16 = arith.constant 2 : index
    %c0_17 = arith.constant 0 : index
    %c0_18 = arith.constant 0 : index
    %13 = vector.load %arg3[%c2_16, %c0_17, %c0_18] : memref<3x8x8xf32, #tpu.memory_space<vmem>>, vector<1x8x8xf32>
    %14 = vector.shape_cast %13 : vector<1x8x8xf32> to vector<8x8xf32>
    %cst_19 = arith.constant dense<0.000000e+00> : vector<8x128xf32>
    %15 = tpu.matmul %14, %12, %cst_19 {dimension_numbers = #tpu.dot_dimension_numbers<[1], [0], [0], [1], [0, 0, 1, 1], [], []>} : vector<8x8xf32>, vector<8x128xf32>, vector<8x128xf32> -> vector<8x128xf32>
    %16 = arith.addf %10, %15 : vector<8x128xf32>
    %c0_20 = arith.constant 0 : index
    %c0_21 = arith.constant 0 : index
    %17 = vector.load %arg4[%c0_20, %c0_21] : memref<8x1xf32, #tpu.memory_space<vmem>>, vector<8x1xf32>
    %18 = vector.broadcast %17 : vector<8x1xf32> to vector<8x128xf32>
    %19 = arith.addf %16, %18 : vector<8x128xf32>
    %c0_22 = arith.constant 0 : index
    %c0_23 = arith.constant 0 : index
    %c0_24 = arith.constant 0 : index
    %20 = vector.load %arg5[%c0_22, %c0_23, %c0_24] : memref<1x8x128xf32, #tpu.memory_space<vmem>>, vector<1x8x128xf32>
    %21 = vector.shape_cast %20 : vector<1x8x128xf32> to vector<8x128xf32>
    %22 = vector.shape_cast %19 : vector<8x128xf32> to vector<1x8x128xf32>
    tpu.vector_store %arg5[%c0_22, %c0_23, %c0_24], %22 {strides = array<i32>} : memref<1x8x128xf32, #tpu.memory_space<vmem>>, vector<1x8x128xf32>,
    return
  }
  func.func @transform_0(%arg0: i32, %arg1: i32) -> (i32, i32, i32, i32) {
    %c0_i32 = arith.constant 0 : i32
    %c0_i32_0 = arith.constant 0 : i32
    %c0_i32_1 = arith.constant 0 : i32
    return %arg0, %arg1, %c0_i32, %c0_i32_0 : i32, i32, i32, i32
  }
  func.func @transform_1(%arg0: i32, %arg1: i32) -> (i32, i32, i32) {
    %c0_i32 = arith.constant 0 : i32
    %c0_i32_0 = arith.constant 0 : i32
    %c0_i32_1 = arith.constant 0 : i32
    %c0_i32_2 = arith.constant 0 : i32
    return %c0_i32, %c0_i32_0, %c0_i32_1 : i32, i32, i32
  }
  func.func @transform_2(%arg0: i32, %arg1: i32) -> (i32, i32) {
    %c0_i32 = arith.constant 0 : i32
    %c0_i32_0 = arith.constant 0 : i32
    %c0_i32_1 = arith.constant 0 : i32
    return %c0_i32, %c0_i32_0 : i32, i32
  }
  func.func @transform_3(%arg0: i32, %arg1: i32) -> (i32, i32, i32) {
    %c0_i32 = arith.constant 0 : i32
    %c0_i32_0 = arith.constant 0 : i32
    return %arg0, %c0_i32, %arg1 : i32, i32, i32
  }
}

</mosaic_0001>

<bundles_post_ra>
// kernel: conv1d_causal.1
= control target key start
LH: loop header
LB: loop body
LE: loop exit
PB: predicated region body
PF: predicated region fallthrough
CT: control target
= control target key end

     0   :  { %8 = vsyncpa [#allocation3], 0  ;;  %s862_s0 = inlined_call_operand.vmem [shape: f32[2,1,8,130], index: 0, kind: input, shape index: {}]   ;;  %s863_s1 = inlined_call_operand.vmem [shape: f32[3,8,8], index: 1, kind: input, shape index: {}]   ;;  %s864_s2 = inlined_call_operand.vmem [shape: f32[8,1], index: 2, kind: input, shape index: {}]   ;;  %s865_s3 = inlined_call_operand.hbm [shape: f32[2,8,128], index: 3, kind: output, shape index: {}]  }
   0x1   :  { %10 = vsyncpa [#allocation3 + $0x1], 0  ;;  %s745_s12 = smov 0   ;;  %s747_s13 = smov 0  }
   0x2   :  { %s749_s14 = smov 0   ;;  %s751_s15 = smov 0  }
   0x3   :  { %s753_s16 = smov 0   ;;  %s755_s17 = smov 0  }
   0x4 LB: > { %s541_s18 = sadd.s32 4294967295, %s717_s17   ;;  %s542_s19 = sadd.s32 4294967294, %s717_s17   ;;  %s717_s17 = sphi %s755_s17, %s16_s17   ;;  %s713_s16 = sphi %s753_s16, %s872_s16   ;;  %s709_s15 = sphi %s751_s15, %s871_s15   ;;  %s705_s14 = sphi %s749_s14, %s870_s14   ;;  %s701_s13 = sphi %s747_s13, %s869_s13   ;;  %s697_s12 = sphi %s745_s12, %s868_s12  }
   0x5   : > { %s28_s20 = sadd.s32 1, %s713_s16  ;;  %s107_s21 = sadd.s32 1, %s705_s14 }
   0x6   : > { %p30_p0 = scmp.ge.s32.totalorder %s28_s20, 2  ;;  %p117_p1 = scmp.ne.s32.totalorder %s705_s14, %s701_s13 }
   0x7   : > { %p118_p2 = scmp.eq.s32.totalorder %s541_s18, 1  ;;  %p123_p3 = scmp.ne.s32.totalorder %s701_s13, %s697_s12 }
   0x8   : > { %s874_s20 = smov (%p30_p0, %s28_s20), 0  ;;  %p124_p5 = scmp.eq.s32.totalorder %s542_s19, 1 }
   0x9   : > { %p785_p4 = por %p118_p2, %p117_p1  ;;  %s102_s23 = ssub.s32 %s713_s16, %s874_s20 }
   0xa   : > { %p545_p6 = scmp.ge.s32.totalorder %s717_s17, 1  ;;  %p105_p7 = scmp.eq.s32.totalorder %s102_s23, 0 }
   0xb   : > { %p792_p8 = por %p124_p5, %p123_p3  ;;  %p160_p9 = scmp.lt.s32.totalorder %s717_s17, 3 }
   0xc   : > { %s798_s25 = scalar_select %p105_p7, %s705_s14, %s107_s21  }
   0xd   : > { %p161_p10 = pnand %p545_p6, %p160_p9 }
   0xe   : > { %p188_p11 = scmp.lt.s32.totalorder (!%p161_p10), %s709_s15, 1  ;;  %s722_s6 = smov (!%p161_p10), 126  }
   0xf   : > { %164 = sbr.rel (%p161_p10) target bundleno = 360 (0x168), region = 32  ;;  %s723_s7 = smov (!%p161_p10), 127  }
  0x10   : > { %s185_s21 = sand.u32 (!%p161_p10), 1, %s701_s13  }
  0x11   : > { %s546_s23 = sshll.u32 (!%p161_p10), %s185_s21, 3  ;;  %s450_s5 = scalar_lea.sflag (!%p161_p10), [#allocation3], %s185_s21 }
  0x14   : > { %v719_v0 = vmov 0.0   ;;  %vm720_vm0 = vmmov 0   ;;  %s189_s26 = scalar_select %p188_p11, %s709_s15, 1  ;;  %v721_v1 = vmov 0   ;;  %vm211_vm1 = vcmask 64512   ;;  %v198_v3 = vld [vmem:[%s863_s1] sm:$0xff] }
  0x15   : > { %565 = vmatprep.subr.mxu0 %v719_v0  ;;  %567 = vmatprep.mubr.msk.f32.mxu0 %vm720_vm0, %v719_v0  ;;  %v441_v5 = vld [vmem:[%s864_s2] sm:$0xff]  ;;  %vm208_vm2 = vcmask 1039360   ;;  %vm364_vm3 = vcmask 1031168   ;;  %v549_v10 = vld [vmem:[%s863_s1 + $0x8] sm:$0xff]  ;;  %v552_v13 = vld [vmem:[%s863_s1 + $0x10] sm:$0xff] }
  0x16   : > { %570 = vmatprep.subr.mxu1 %v719_v0  ;;  %572 = vmatprep.mubr.msk.f32.mxu1 %vm720_vm0, %v719_v0  ;;  %s558_s27 = sshll.u32 %s189_s26, 4  ;;  %s555_s26 = sshll.u32 %s709_s15, 7 }
  0x17   : > { %s196_s30 = scalar_lea.vmem %s862_s0, %s558_s27  ;;  %640 = vset.pattern.permute.xlu0 %v721_v1  ;;  %s187_s27 = scalar_lea.vmem [#allocation2], %s546_s23 }
  0x18   : > { %v197_v2 = vld [vmem:[%s196_s30] sm:$0xff]  ;;  %v199_v4 = vld [vmem:[%s196_s30 + $0x8] sm:$0xff]  ;;  %s464_s28 = sshll.u32 %s187_s27, 4  ;;  %s462_s4 = scalar_lea.hbm %s865_s3, %s555_s26  ;;  %s465_s28 = int_to_ptr.vmem [resolvable:$true] %s464_s28 }
  0x19   : > { %360 = vrot.lane.b32.xlu1 %v197_v2, %s722_s6  ;;  %204 = vrot.lane.b32.xlu0 %v197_v2, %s723_s7 }
  0x1a   : > { %571 = vmatpush3.msra.mxu1 %v197_v2 }
  0x1b   : > { %573 = vmatmul.mubr.msk.f32.vlgmr.msra.gmra.mxu1 %vm211_vm1, %v198_v3 }
  0x1d   : > { %362 = vrot.lane.b32.xlu1 %v199_v4, %s722_s6  ;;  %206 = vrot.lane.b32.xlu0 %v199_v4, %s723_s7  ;;  %s641_s6 = scalar_lea.vmem %s465_s28, 128  ;;  %s724_s7 = smov [#allocation2]  }
  0x1e   : > { %p642_p12 = scmp.ne.s32.totalorder %s465_s28, %s641_s6  ;;  %s645_s8 = sshll.u32 %s724_s7, 4  ;;  %s646_s8 = int_to_ptr.vmem [resolvable:$false] %s645_s8 }
  0x1f   : > { %s647_s15 = scalar_lea.vmem %s646_s8, 256  ;;  %p648_p1 = scmp.lt.s32.totalorder %s465_s28, %s646_s8 }
  0x20   : > { %p643_p13 = pnand %p642_p12, %p785_p4  ;;  %p649_p2 = scmp.lt.s32.totalorder %s647_s15, %s641_s6 }
  0x21   : > { %444 = vperm.xlu0 %640, %v441_v5  }
  0x22   : > { %p644_p0 = pneg %p643_p13  ;;  %p650_p3 = por %p649_p2, %p648_p1 }
  0x24   : > { %p651_p5 = pnand %p650_p3, %p644_p0 }
  0x8b   : > { %v361_v6 = vpop.permute.xlu1 %360  ;;  %v205_v7 = vpop.permute.xlu0 %204 }
  0x8f   : > { %v363_v8 = vpop.permute.xlu1 %362  ;;  %v207_v9 = vpop.permute.xlu0 %206 }
  0x90   : > { %v209_v11 = vsel %vm208_vm2, %v205_v7, %v207_v9  ;;  %v365_v12 = vsel %vm364_vm3, %v361_v6, %v363_v8 }
  0x91   : > { %566 = vmatpush3.msra.mxu0 %v209_v11 }
  0x92   : > { %568 = vmatmul.mubr.msk.f32.vlgmr.msra.gmra.mxu0 %vm211_vm1, %v549_v10  ;;  %575 = vmatprep.subr.mxu0 %v719_v0 }
  0x93   : > { %576 = vmatpush3.msra.mxu0 %v365_v12  ;;  %577 = vmatprep.mubr.msk.f32.mxu0 %vm720_vm0, %v719_v0 }
  0x96   : > { %578 = vmatmul.mubr.msk.f32.vlgmr.msra.gmra.mxu0 %vm211_vm1, %v552_v13 }
  0x9c   : > { %v445_v20 = vpop.permute.xlu0 %444 }
  0xdb   : > { %v354_v14 = vpop.f32.mrf.mxu1 }
  0xdd   : > { %v574_v15 = vpop.f32.mrf.mxu1 }
 0x152   : > { %v281_v16 = vpop.f32.mrf.mxu0 }
 0x153   : > { %v355_v18 = vadd.f32 %v354_v14, %v281_v16 }
 0x154   : > { %v569_v17 = vpop.f32.mrf.mxu0 }
 0x156   : > { %v436_v19 = vpop.f32.mrf.mxu0 }
 0x157   : > { %v440_v21 = vadd.f32 %v436_v19, %v355_v18 }
 0x158   : > { %v579_v22 = vpop.f32.mrf.mxu0 }
 0x159   : > { %v447_v23 = vadd.f32 %v445_v20, %v440_v21 }
 0x15b   : > { %448 = vst [vmem:[%s187_s27] sm:$0xff] %v447_v23 }
 0x15c   : > { %654 = shalt.err (!%p651_p5)
}
 0x15d   : > { %s655_s9 = scalar_lea.hbm %s462_s4, 128  ;;  %s659_s18 = scalar_lea.hbm %s865_s3, 256 }
 0x15e   : > { %p656_p6 = scmp.ne.s32.totalorder %s462_s4, %s655_s9  ;;  %p660_p10 = scmp.lt.s32.totalorder %s462_s4, %s865_s3 }
 0x15f   : > { %p661_p11 = scmp.lt.s32.totalorder %s659_s18, %s655_s9 }
 0x160   : > { %p657_p7 = pnand %p656_p6, %p785_p4 }
 0x161   : > { %p662_p12 = por %p661_p11, %p660_p10 }
 0x162   : > { %p658_p9 = pneg %p657_p7 }
 0x164   : > { %p663_p13 = pnand %p662_p12, %p658_p9 }
 0x166   : > { %666 = shalt.err (!%p663_p13)
}
 0x167   : > { %580 = dma.vmem_to_hbm [thread:$0]  (%p785_p4), %s465_s28, 128, %s462_s4, %s450_s5  }
 0x168 PF: > { %p586_p0 = scmp.ge.s32.totalorder %s717_s17, 2  ;;  %s476_s23 = sand.u32 1, %s697_s12  }
 0x169   : > { %s477_s26 = scalar_lea.sflag [#allocation3], %s476_s23 }
 0x16a   : > { %p583_p1 = pnand %p586_p0, %p792_p8 }
 0x16c   : > { %p584_p2 = pneg %p583_p1 }
 0x16e   : > { %692 = dma.done.wait (%p584_p2), %s477_s26, 128  }
 0x16f   : > { %694 = vsyncadd (%p584_p2), %s477_s26, 4294967168  ;;  %s16_s17 = sadd.s32 1, %s717_s17   ;;  %s868_s12 = smov %s701_s13 }
 0x170   : > { %p13_p3 = scmp.ge.s32.totalorder %s16_s17, 4   ;;  %s869_s13 = smov %s705_s14 }
 0x171   : > { %s870_s14 = smov %s798_s25  ;;  %s871_s15 = smov %s713_s16 }
 0x172   : > { %s872_s16 = smov %s874_s20  ;;  %15 = sbr.rel (!%p13_p3) target bundleno = 4 (0x4), region = 69 }
 0x177   :  { %482 = vsyncpa [#allocation3], 1 }
 0x178   :  { %484 = vsyncpa [#allocation3 + $0x1], 1 }

</bundles_post_ra>
